<compile_context>
chip_gen: v6e
topology: v6e:2x2x1
jax: 0.10.0
libtpu: 0.0.40
codegen_flags: <defaults>
</compile_context>

<pallas_src>
import functools
import math

import jax
import jax.numpy as jnp
from jax.experimental import pallas as pl
from jax.experimental.pallas import tpu as pltpu

_BN_EPS = 1e-5
_COMPUTE_DTYPE = jnp.bfloat16   # MXU operand / activation storage dtype
_LANES = 128


# ----------------------------------------------------------------------------
# Fused BasicBlock kernel: one grid step == B images, ONE matmul per conv.
# ----------------------------------------------------------------------------
def _make_fused_kernel(B, H, Ho, Wlane, Nc, stride, has_down):
    Hph = H // 2 + 1
    if stride == 1:
        tap_base = (0, 1, 2)        # conv1 tap kh reads padded rows oh+kh
        down_base = 1               # 1x1 conv reads padded row oh+1
    else:
        # Row-phase layout for stride 2 (see wrapper): xs holds
        #   [0, x[1], x[3], ..., x[H-1],  x[0], x[2], ..., x[H-2], 0]
        # i.e. even padded rows (2e) live at xs[e], odd padded rows (2o+1)
        # live at xs[Hph+o].  conv1 taps need padded rows 2oh, 2oh+1, 2oh+2.
        tap_base = (0, Hph, 1)
        down_base = Hph             # 1x1 stride-2 conv reads padded row 2oh+1

    def kernel(*refs):
        if has_down:
            x_ref, r1_ref, r2_ref, rd_ref, b_ref, o_ref, xs, ypad = refs
        else:
            x_ref, r1_ref, r2_ref, b_ref, o_ref, xs, ypad = refs

        # ---- H-padded (and phase-split for stride 2) input slab in VMEM ----
        xs[:, 0:1, :] = jnp.zeros((B, 1, Wlane), _COMPUTE_DTYPE)
        xs[:, H + 1:H + 2, :] = jnp.zeros((B, 1, Wlane), _COMPUTE_DTYPE)
        xs[:, 1:H + 1, :] = x_ref[...]

        # ---- conv1 (+ folded BN1) + ReLU : ONE matmul over all 3 kh taps ---
        lhs1 = jnp.concatenate(
            [xs[:, b0:b0 + Ho, :] for b0 in tap_base], axis=-1
        ).reshape(B * Ho, 3 * Wlane)
        y = jnp.dot(lhs1, r1_ref[...], preferred_element_type=jnp.float32)
        y = jnp.maximum(y + b_ref[0:1, :], 0.0)

        # ---- VMEM-resident H-padded intermediate (never touches HBM) -------
        ypad[:, 0:1, :] = jnp.zeros((B, 1, Nc), _COMPUTE_DTYPE)
        ypad[:, Ho + 1:Ho + 2, :] = jnp.zeros((B, 1, Nc), _COMPUTE_DTYPE)
        ypad[:, 1:Ho + 1, :] = y.reshape(B, Ho, Nc).astype(_COMPUTE_DTYPE)

        # ---- conv2 (+ folded BN2) : ONE matmul over all 3 kh taps -----------
        lhs2 = jnp.concatenate(
            [ypad[:, kh:kh + Ho, :] for kh in range(3)], axis=-1
        ).reshape(B * Ho, 3 * Nc)
        z = jnp.dot(lhs2, r2_ref[...], preferred_element_type=jnp.float32)
        z = z + b_ref[1:2, :]

        # ---- residual branch -------------------------------------------------
        if has_down:
            lhs_d = xs[:, down_base:down_base + Ho, :].reshape(B * Ho, Wlane)
            res = jnp.dot(lhs_d, rd_ref[...],
                          preferred_element_type=jnp.float32) + b_ref[2:3, :]
        else:
            res = x_ref[...].reshape(B * Ho, Nc).astype(jnp.float32)

        out = jnp.maximum(z + res, 0.0)
        o_ref[...] = out.reshape(B, Ho, Nc).astype(o_ref.dtype)

    return kernel


# ----------------------------------------------------------------------------
# Wrapper-side helpers: BN folding, channel padding, banded weight build.
# ----------------------------------------------------------------------------
def _fold_bn(bn):
    scale = bn["gamma"] * jax.lax.rsqrt(bn["var"] + _BN_EPS)
    bias = bn["beta"] - bn["mean"] * scale
    return scale, bias


def _pad_channels(c, w):
    """Smallest c_p >= c such that w * c_p is an exact multiple of 128 lanes."""
    m = _LANES // math.gcd(w, _LANES)
    return ((c + m - 1) // m) * m


def _pad_oihw(w, c_out_p, c_in_p):
    c_out, c_in = w.shape[:2]
    return jnp.pad(w, ((0, c_out_p - c_out), (0, c_in_p - c_in), (0, 0), (0, 0)))


def _pad_vec(v, c_p):
    return jnp.pad(v, (0, c_p - v.shape[0]))


def _banded_weight(w_oihw, scale, w_in, w_out, stride, pad, dtype):
    """BN-scale-folded conv weight expanded into a single fused
    (Kh * w_in*Cin, w_out*Cout) RHS encoding the kw taps, W-padding, W-stride:

      R[kh*w_in*Cin + iw*Cin + c, ow*Cout + co] = w[co,c,kh,kw] * scale[co]
                                  with kw = iw - ow*stride + pad in [0, Kw).

    The matching LHS is the lane-concat of the Kh row windows, so the whole
    conv is ONE MXU matmul.
    """
    c_out, c_in, k_h, k_w = w_oihw.shape
    w = jnp.transpose(w_oihw, (2, 3, 1, 0)).astype(jnp.float32)     # (Kh,Kw,Cin,Cout)
    w = w * scale.astype(jnp.float32)[None, None, None, :]
    iw = jnp.arange(w_in)[None, :, None]
    ow = jnp.arange(w_out)[None, None, :]
    kw = jnp.arange(k_w)[:, None, None]
    sel = (iw == ow * stride + kw - pad).astype(jnp.float32)        # (Kw,w_in,w_out)
    r = jnp.einsum("kio,hkcd->hicod", sel, w)                       # (Kh,w_in,Cin,w_out,Cout)
    return r.reshape(k_h * w_in * c_in, w_out * c_out).astype(dtype)


def _pick_batch_block(n, ho):
    """Largest divisor B of n with B*Ho <= 256 rows per MXU call; for large n
    this keeps grid = n//B >= 2 so both v7x TensorCores get work."""
    target = max(1, 256 // max(ho, 1))
    best = 1
    for b in range(1, n + 1):
        if n % b == 0 and b <= target:
            best = b
    return best


# ----------------------------------------------------------------------------
# Fused forward (NCHW f32 in / NCHW f32 out, matching the PyTorch module).
# Internally everything is lane-dense bf16; when chaining BasicBlocks the
# NCHW round-trip below should be skipped and the kernel output (lane-dense
# (N, Ho, Wo*Cout_p) bf16) consumed directly.
# ----------------------------------------------------------------------------
@functools.partial(jax.jit, static_argnums=(2, 3))
def basic_block_forward(x_nchw, params, stride, has_down):
    N, Cin, H, W = x_nchw.shape
    Cout = params["w1"].shape[0]
    K, pad = 3, 1
    Ho = (H + 2 * pad - K) // stride + 1
    Wo = (W + 2 * pad - K) // stride + 1

    Cin_p = _pad_channels(Cin, W)       # W  * Cin_p  % 128 == 0
    Cout_p = _pad_channels(Cout, Wo)    # Wo * Cout_p % 128 == 0
    Wlane, Nc = W * Cin_p, Wo * Cout_p

    if not has_down:
        assert Cin == Cout and stride == 1 and Wlane == Nc
    if stride == 2:
        assert H % 2 == 0, "stride-2 row-phase split assumes even H"

    B = _pick_batch_block(N, Ho)        # images per grid step -> M = B*Ho rows

    # NCHW -> lane-dense (N, H, W*Cin_p) bf16.  For stride 2, rows are
    # reordered to [odd rows ; even rows] so the kernel's phase-split padded
    # slab is a single contiguous copy.  H-padding happens inside the kernel.
    x = jnp.transpose(x_nchw, (0, 2, 3, 1))
    x = jnp.pad(x, ((0, 0), (0, 0), (0, 0), (0, Cin_p - Cin)))
    x = x.reshape(N, H, Wlane)
    if stride == 2:
        x = jnp.concatenate([x[:, 1::2, :], x[:, 0::2, :]], axis=1)
    x = x.astype(_COMPUTE_DTYPE)

    # Fold BN into banded weights / bias rows (all channel-padded with zeros).
    s1, b1 = _fold_bn(params["bn1"])
    s2, b2 = _fold_bn(params["bn2"])
    r1 = _banded_weight(_pad_oihw(params["w1"], Cout_p, Cin_p),
                        _pad_vec(s1, Cout_p), W, Wo, stride, pad,
                        _COMPUTE_DTYPE)                         # (3*Wlane, Nc)
    r2 = _banded_weight(_pad_oihw(params["w2"], Cout_p, Cout_p),
                        _pad_vec(s2, Cout_p), Wo, Wo, 1, pad,
                        _COMPUTE_DTYPE)                         # (3*Nc, Nc)
    bias_rows = [jnp.tile(_pad_vec(b1, Cout_p), Wo),
                 jnp.tile(_pad_vec(b2, Cout_p), Wo)]

    args = [x, r1, r2]
    in_specs = [
        pl.BlockSpec((B, H, Wlane), lambda g: (g, 0, 0)),
        pl.BlockSpec((3 * Wlane, Nc), lambda g: (0, 0)),
        pl.BlockSpec((3 * Nc, Nc), lambda g: (0, 0)),
    ]
    if has_down:
        sd, bd = _fold_bn(params["bnd"])
        rd = _banded_weight(_pad_oihw(params["wd"], Cout_p, Cin_p),
                            _pad_vec(sd, Cout_p), W, Wo, stride, 0,
                            _COMPUTE_DTYPE)                     # (Wlane, Nc)
        args.append(rd)
        in_specs.append(pl.BlockSpec((Wlane, Nc), lambda g: (0, 0)))
        bias_rows.append(jnp.tile(_pad_vec(bd, Cout_p), Wo))
    else:
        bias_rows.append(jnp.zeros((Nc,), jnp.float32))
    bias = jnp.stack(bias_rows).astype(jnp.float32)             # (3, Nc)
    args.append(bias)
    in_specs.append(pl.BlockSpec((3, Nc), lambda g: (0, 0)))

    kernel = _make_fused_kernel(B, H, Ho, Wlane, Nc, stride, has_down)
    out = pl.pallas_call(
        kernel,
        out_shape=jax.ShapeDtypeStruct((N, Ho, Nc), _COMPUTE_DTYPE),
        grid=(N // B,),
        in_specs=in_specs,
        out_specs=pl.BlockSpec((B, Ho, Nc), lambda g: (g, 0, 0)),
        scratch_shapes=[
            pltpu.VMEM((B, H + 2, Wlane), _COMPUTE_DTYPE),   # padded / phase-split x
            pltpu.VMEM((B, Ho + 2, Nc), _COMPUTE_DTYPE),     # padded conv1 output
        ],
        compiler_params=pltpu.CompilerParams(
            dimension_semantics=("parallel",),
            vmem_limit_bytes=32 * 1024 * 1024,
        ),
    )(*args)

    # Lane-dense bf16 (N, Ho, Wo*Cout_p) -> NCHW f32 only for parity with the
    # PyTorch module (chained blocks should consume `out` directly).
    out = out.reshape(N, Ho, Wo, Cout_p)[..., :Cout]
    return jnp.transpose(out, (0, 3, 1, 2)).astype(jnp.float32)


# ----------------------------------------------------------------------------
# Parameter init + pure-JAX f32 reference (BN in inference mode).
# ----------------------------------------------------------------------------
def _bn_params(key, c):
    k1, k2, k3, k4 = jax.random.split(key, 4)
    return dict(gamma=jax.random.uniform(k1, (c,), minval=0.5, maxval=1.5),
                beta=0.1 * jax.random.normal(k2, (c,)),
                mean=0.1 * jax.random.normal(k3, (c,)),
                var=jax.random.uniform(k4, (c,), minval=0.5, maxval=1.5))


def init_basic_block(key, c_in, c_out, is_downsample):
    stride = 2 if is_downsample else 1
    has_down = is_downsample or (c_in != c_out)
    ks = jax.random.split(key, 6)
    params = dict(
        w1=0.1 * jax.random.normal(ks[0], (c_out, c_in, 3, 3), jnp.float32),
        bn1=_bn_params(ks[1], c_out),
        w2=0.1 * jax.random.normal(ks[2], (c_out, c_out, 3, 3), jnp.float32),
        bn2=_bn_params(ks[3], c_out),
    )
    if has_down:
        params["wd"] = 0.1 * jax.random.normal(ks[4], (c_out, c_in, 1, 1), jnp.float32)
        params["bnd"] = _bn_params(ks[5], c_out)
    return params, stride, has_down


def ref_forward(x, params, stride, has_down):
    def conv(x, w, s, pad):
        return jax.lax.conv_general_dilated(
            x, w, (s, s), [(pad, pad), (pad, pad)],
            dimension_numbers=("NCHW", "OIHW", "NCHW"))

    def bn(x, p):
        sc = (p["gamma"] / jnp.sqrt(p["var"] + _BN_EPS))[None, :, None, None]
        return (x - p["mean"][None, :, None, None]) * sc + p["beta"][None, :, None, None]

    y = jax.nn.relu(bn(conv(x, params["w1"], stride, 1), params["bn1"]))
    y = bn(conv(y, params["w2"], 1, 1), params["bn2"])
    xr = bn(conv(x, params["wd"], stride, 0), params["bnd"]) if has_down else x
    return jax.nn.relu(xr + y)


if __name__ == "__main__":
    key = jax.random.PRNGKey(0)
    configs = [
        dict(c_in=4, c_out=8, is_downsample=True),    # stride-2 + 1x1 downsample branch
        dict(c_in=8, c_out=8, is_downsample=False),   # identity residual branch
        dict(c_in=4, c_out=8, is_downsample=False),   # stride-1, 1x1 channel-up shortcut
    ]
    for cfg in configs:
        key, k_x, k_p = jax.random.split(key, 3)
        x = jax.random.normal(k_x, (2, cfg["c_in"], 16, 16), jnp.float32)
        params, stride, has_down = init_basic_block(
            k_p, cfg["c_in"], cfg["c_out"], cfg["is_downsample"])

        out = jax.block_until_ready(basic_block_forward(x, params, stride, has_down))
        ref = ref_forward(x, params, stride, has_down)
        assert out.shape == ref.shape, (out.shape, ref.shape)
        # Per-element check, relative where the reference is large; accounts for
        # bf16 matmul operands / bf16 activation storage vs the f32 reference.
        err = float(jnp.max(jnp.abs(out - ref) / (1.0 + jnp.abs(ref))))
        assert err < 3e-2, f"relative error too large: {err}"

    print("KERNEL_OK")
</pallas_src>

<mosaic_0001>
module attributes {stable_mosaic.version = 11 : i64} {
  func.func @kernel(%arg0: i32, %arg1: memref<2x16x128xbf16, #tpu.memory_space<vmem>>, %arg2: memref<384x128xbf16, #tpu.memory_space<vmem>>, %arg3: memref<384x128xbf16, #tpu.memory_space<vmem>>, %arg4: memref<128x128xbf16, #tpu.memory_space<vmem>>, %arg5: memref<3x128xf32, #tpu.memory_space<vmem>>, %arg6: memref<2x8x128xbf16, #tpu.memory_space<vmem>>, %arg7: memref<2x18x128xbf16, #tpu.memory_space<vmem>>, %arg8: memref<2x10x128xbf16, #tpu.memory_space<vmem>>) attributes {dimension_semantics = [#tpu.dimension_semantics<parallel>], iteration_bounds = array<i64: 1>, scalar_prefetch = 0 : i64, scratch_operands = 2 : i64, tpu.core_type = #tpu.core_type<tc>, window_params = [{transform_indices = @transform_0, window_bounds = array<i64: 2, 16, 128>}, {pipeline_mode = #tpu.pipeline_mode<synchronous>, transform_indices = @transform_1, window_bounds = array<i64: 384, 128>}, {pipeline_mode = #tpu.pipeline_mode<synchronous>, transform_indices = @transform_2, window_bounds = array<i64: 384, 128>}, {pipeline_mode = #tpu.pipeline_mode<synchronous>, transform_indices = @transform_3, window_bounds = array<i64: 128, 128>}, {pipeline_mode = #tpu.pipeline_mode<synchronous>, transform_indices = @transform_4, window_bounds = array<i64: 3, 128>}, {transform_indices = @transform_5, window_bounds = array<i64: 2, 8, 128>}]} {
    %cst = arith.constant 0.000000e+00 : bf16
    %0 = vector.broadcast %cst : bf16 to vector<2x1x128xbf16>
    %c0 = arith.constant 0 : index
    %c0_0 = arith.constant 0 : index
    %c0_1 = arith.constant 0 : index
    %1 = vector.load %arg7[%c0, %c0_0, %c0_1] : memref<2x18x128xbf16, #tpu.memory_space<vmem>>, vector<2x1x128xbf16>
    tpu.vector_store %arg7[%c0, %c0_0, %c0_1], %0 {strides = array<i32>} : memref<2x18x128xbf16, #tpu.memory_space<vmem>>, vector<2x1x128xbf16>,
    %cst_2 = arith.constant 0.000000e+00 : bf16
    %2 = vector.broadcast %cst_2 : bf16 to vector<2x1x128xbf16>
    %c0_3 = arith.constant 0 : index
    %c17 = arith.constant 17 : index
    %c0_4 = arith.constant 0 : index
    %3 = vector.load %arg7[%c0_3, %c17, %c0_4] : memref<2x18x128xbf16, #tpu.memory_space<vmem>>, vector<2x1x128xbf16>
    tpu.vector_store %arg7[%c0_3, %c17, %c0_4], %2 {strides = array<i32>} : memref<2x18x128xbf16, #tpu.memory_space<vmem>>, vector<2x1x128xbf16>,
    %c0_5 = arith.constant 0 : index
    %c0_6 = arith.constant 0 : index
    %c0_7 = arith.constant 0 : index
    %4 = vector.load %arg1[%c0_5, %c0_6, %c0_7] : memref<2x16x128xbf16, #tpu.memory_space<vmem>>, vector<2x16x128xbf16>
    %c0_8 = arith.constant 0 : index
    %c1 = arith.constant 1 : index
    %c0_9 = arith.constant 0 : index
    %5 = vector.load %arg7[%c0_8, %c1, %c0_9] : memref<2x18x128xbf16, #tpu.memory_space<vmem>>, vector<2x16x128xbf16>
    tpu.vector_store %arg7[%c0_8, %c1, %c0_9], %4 {strides = array<i32>} : memref<2x18x128xbf16, #tpu.memory_space<vmem>>, vector<2x16x128xbf16>,
    %c0_10 = arith.constant 0 : index
    %c0_11 = arith.constant 0 : index
    %c0_12 = arith.constant 0 : index
    %6 = vector.load %arg7[%c0_10, %c0_11, %c0_12] : memref<2x18x128xbf16, #tpu.memory_space<vmem>>, vector<2x8x128xbf16>
    %c0_13 = arith.constant 0 : index
    %c9 = arith.constant 9 : index
    %c0_14 = arith.constant 0 : index
    %7 = vector.load %arg7[%c0_13, %c9, %c0_14] : memref<2x18x128xbf16, #tpu.memory_space<vmem>>, vector<2x8x128xbf16>
    %c0_15 = arith.constant 0 : index
    %c1_16 = arith.constant 1 : index
    %c0_17 = arith.constant 0 : index
    %8 = vector.load %arg7[%c0_15, %c1_16, %c0_17] : memref<2x18x128xbf16, #tpu.memory_space<vmem>>, vector<2x8x128xbf16>
    %9 = tpu.concatenate %6, %7, %8 in 2 : vector<2x8x128xbf16>, vector<2x8x128xbf16>, vector<2x8x128xbf16> -> vector<2x8x384xbf16>
    %10 = vector.shape_cast %9 : vector<2x8x384xbf16> to vector<16x384xbf16>
    %c0_18 = arith.constant 0 : index
    %c0_19 = arith.constant 0 : index
    %11 = vector.load %arg2[%c0_18, %c0_19] : memref<384x128xbf16, #tpu.memory_space<vmem>>, vector<384x128xbf16>
    %cst_20 = arith.constant dense<0.000000e+00> : vector<16x128xf32>
    %12 = tpu.matmul %10, %11, %cst_20 {dimension_numbers = #tpu.dot_dimension_numbers<[1], [0], [0], [1], [0, 0, 1, 1], [], []>} : vector<16x384xbf16>, vector<384x128xbf16>, vector<16x128xf32> -> vector<16x128xf32>
    %c0_21 = arith.constant 0 : index
    %c0_22 = arith.constant 0 : index
    %13 = vector.load %arg5[%c0_21, %c0_22] : memref<3x128xf32, #tpu.memory_space<vmem>>, vector<1x128xf32>
    %14 = vector.broadcast %13 : vector<1x128xf32> to vector<16x128xf32>
    %15 = arith.addf %12, %14 : vector<16x128xf32>
    %cst_23 = arith.constant 0.000000e+00 : f32
    %16 = vector.broadcast %cst_23 : f32 to vector<16x128xf32>
    %17 = arith.maximumf %15, %16 : vector<16x128xf32>
    %cst_24 = arith.constant 0.000000e+00 : bf16
    %18 = vector.broadcast %cst_24 : bf16 to vector<2x1x128xbf16>
    %c0_25 = arith.constant 0 : index
    %c0_26 = arith.constant 0 : index
    %c0_27 = arith.constant 0 : index
    %19 = vector.load %arg8[%c0_25, %c0_26, %c0_27] : memref<2x10x128xbf16, #tpu.memory_space<vmem>>, vector<2x1x128xbf16>
    tpu.vector_store %arg8[%c0_25, %c0_26, %c0_27], %18 {strides = array<i32>} : memref<2x10x128xbf16, #tpu.memory_space<vmem>>, vector<2x1x128xbf16>,
    %cst_28 = arith.constant 0.000000e+00 : bf16
    %20 = vector.broadcast %cst_28 : bf16 to vector<2x1x128xbf16>
    %c0_29 = arith.constant 0 : index
    %c9_30 = arith.constant 9 : index
    %c0_31 = arith.constant 0 : index
    %21 = vector.load %arg8[%c0_29, %c9_30, %c0_31] : memref<2x10x128xbf16, #tpu.memory_space<vmem>>, vector<2x1x128xbf16>
    tpu.vector_store %arg8[%c0_29, %c9_30, %c0_31], %20 {strides = array<i32>} : memref<2x10x128xbf16, #tpu.memory_space<vmem>>, vector<2x1x128xbf16>,
    %22 = vector.shape_cast %17 : vector<16x128xf32> to vector<2x8x128xf32>
    %23 = arith.truncf %22 : vector<2x8x128xf32> to vector<2x8x128xbf16>
    %c0_32 = arith.constant 0 : index
    %c1_33 = arith.constant 1 : index
    %c0_34 = arith.constant 0 : index
    %24 = vector.load %arg8[%c0_32, %c1_33, %c0_34] : memref<2x10x128xbf16, #tpu.memory_space<vmem>>, vector<2x8x128xbf16>
    tpu.vector_store %arg8[%c0_32, %c1_33, %c0_34], %23 {strides = array<i32>} : memref<2x10x128xbf16, #tpu.memory_space<vmem>>, vector<2x8x128xbf16>,
    %c0_35 = arith.constant 0 : index
    %c0_36 = arith.constant 0 : index
    %c0_37 = arith.constant 0 : index
    %25 = vector.load %arg8[%c0_35, %c0_36, %c0_37] : memref<2x10x128xbf16, #tpu.memory_space<vmem>>, vector<2x8x128xbf16>
    %c0_38 = arith.constant 0 : index
    %c1_39 = arith.constant 1 : index
    %c0_40 = arith.constant 0 : index
    %26 = vector.load %arg8[%c0_38, %c1_39, %c0_40] : memref<2x10x128xbf16, #tpu.memory_space<vmem>>, vector<2x8x128xbf16>
    %c0_41 = arith.constant 0 : index
    %c2 = arith.constant 2 : index
    %c0_42 = arith.constant 0 : index
    %27 = vector.load %arg8[%c0_41, %c2, %c0_42] : memref<2x10x128xbf16, #tpu.memory_space<vmem>>, vector<2x8x128xbf16>
    %28 = tpu.concatenate %25, %26, %27 in 2 : vector<2x8x128xbf16>, vector<2x8x128xbf16>, vector<2x8x128xbf16> -> vector<2x8x384xbf16>
    %29 = vector.shape_cast %28 : vector<2x8x384xbf16> to vector<16x384xbf16>
    %c0_43 = arith.constant 0 : index
    %c0_44 = arith.constant 0 : index
    %30 = vector.load %arg3[%c0_43, %c0_44] : memref<384x128xbf16, #tpu.memory_space<vmem>>, vector<384x128xbf16>
    %cst_45 = arith.constant dense<0.000000e+00> : vector<16x128xf32>
    %31 = tpu.matmul %29, %30, %cst_45 {dimension_numbers = #tpu.dot_dimension_numbers<[1], [0], [0], [1], [0, 0, 1, 1], [], []>} : vector<16x384xbf16>, vector<384x128xbf16>, vector<16x128xf32> -> vector<16x128xf32>
    %c1_46 = arith.constant 1 : index
    %c0_47 = arith.constant 0 : index
    %32 = vector.load %arg5[%c1_46, %c0_47] : memref<3x128xf32, #tpu.memory_space<vmem>>, vector<1x128xf32>
    %33 = vector.broadcast %32 : vector<1x128xf32> to vector<16x128xf32>
    %34 = arith.addf %31, %33 : vector<16x128xf32>
    %c0_48 = arith.constant 0 : index
    %c9_49 = arith.constant 9 : index
    %c0_50 = arith.constant 0 : index
    %35 = vector.load %arg7[%c0_48, %c9_49, %c0_50] : memref<2x18x128xbf16, #tpu.memory_space<vmem>>, vector<2x8x128xbf16>
    %36 = vector.shape_cast %35 : vector<2x8x128xbf16> to vector<16x128xbf16>
    %c0_51 = arith.constant 0 : index
    %c0_52 = arith.constant 0 : index
    %37 = vector.load %arg4[%c0_51, %c0_52] : memref<128x128xbf16, #tpu.memory_space<vmem>>, vector<128x128xbf16>
    %cst_53 = arith.constant dense<0.000000e+00> : vector<16x128xf32>
    %38 = tpu.matmul %36, %37, %cst_53 {dimension_numbers = #tpu.dot_dimension_numbers<[1], [0], [0], [1], [0, 0, 1, 1], [], []>} : vector<16x128xbf16>, vector<128x128xbf16>, vector<16x128xf32> -> vector<16x128xf32>
    %c2_54 = arith.constant 2 : index
    %c0_55 = arith.constant 0 : index
    %39 = vector.load %arg5[%c2_54, %c0_55] : memref<3x128xf32, #tpu.memory_space<vmem>>, vector<1x128xf32>
    %40 = vector.broadcast %39 : vector<1x128xf32> to vector<16x128xf32>
    %41 = arith.addf %38, %40 : vector<16x128xf32>
    %42 = arith.addf %34, %41 : vector<16x128xf32>
    %cst_56 = arith.constant 0.000000e+00 : f32
    %43 = vector.broadcast %cst_56 : f32 to vector<16x128xf32>
    %44 = arith.maximumf %42, %43 : vector<16x128xf32>
    %45 = vector.shape_cast %44 : vector<16x128xf32> to vector<2x8x128xf32>
    %46 = arith.truncf %45 : vector<2x8x128xf32> to vector<2x8x128xbf16>
    %c0_57 = arith.constant 0 : index
    %c0_58 = arith.constant 0 : index
    %c0_59 = arith.constant 0 : index
    %47 = vector.load %arg6[%c0_57, %c0_58, %c0_59] : memref<2x8x128xbf16, #tpu.memory_space<vmem>>, vector<2x8x128xbf16>
    tpu.vector_store %arg6[%c0_57, %c0_58, %c0_59], %46 {strides = array<i32>} : memref<2x8x128xbf16, #tpu.memory_space<vmem>>, vector<2x8x128xbf16>,
    return
  }
  func.func @transform_0(%arg0: i32) -> (i32, i32, i32) {
    %c0_i32 = arith.constant 0 : i32
    %c0_i32_0 = arith.constant 0 : i32
    %c0_i32_1 = arith.constant 0 : i32
    return %arg0, %c0_i32, %c0_i32_0 : i32, i32, i32
  }
  func.func @transform_1(%arg0: i32) -> (i32, i32) {
    %c0_i32 = arith.constant 0 : i32
    %c0_i32_0 = arith.constant 0 : i32
    %c0_i32_1 = arith.constant 0 : i32
    return %c0_i32, %c0_i32_0 : i32, i32
  }
  func.func @transform_2(%arg0: i32) -> (i32, i32) {
    %c0_i32 = arith.constant 0 : i32
    %c0_i32_0 = arith.constant 0 : i32
    %c0_i32_1 = arith.constant 0 : i32
    return %c0_i32, %c0_i32_0 : i32, i32
  }
  func.func @transform_3(%arg0: i32) -> (i32, i32) {
    %c0_i32 = arith.constant 0 : i32
    %c0_i32_0 = arith.constant 0 : i32
    %c0_i32_1 = arith.constant 0 : i32
    return %c0_i32, %c0_i32_0 : i32, i32
  }
  func.func @transform_4(%arg0: i32) -> (i32, i32) {
    %c0_i32 = arith.constant 0 : i32
    %c0_i32_0 = arith.constant 0 : i32
    %c0_i32_1 = arith.constant 0 : i32
    return %c0_i32, %c0_i32_0 : i32, i32
  }
  func.func @transform_5(%arg0: i32) -> (i32, i32, i32) {
    %c0_i32 = arith.constant 0 : i32
    %c0_i32_0 = arith.constant 0 : i32
    %c0_i32_1 = arith.constant 0 : i32
    return %arg0, %c0_i32, %c0_i32_0 : i32, i32, i32
  }
}

</mosaic_0001>

<bundles_post_ra>
// kernel: tile.26
= control target key start
LH: loop header
LB: loop body
LE: loop exit
PB: predicated region body
PF: predicated region fallthrough
CT: control target
= control target key end

     0   :  { %s22_s0 = inlined_call_operand.vmem [shape: f32[16], index: 0, kind: input, shape index: {}]   ;;  %s23_s1 = inlined_call_operand.vmem [shape: f32[8,16], index: 1, kind: output, shape index: {}]  }
   0x1   :  { %v4_v0 = vld [vmem:[%s22_s0] ss:$0 sm:$0xff] }
   0x2   :  { %5 = vst [vmem:[%s23_s1] sm:$0xff] %v4_v0 }

// kernel: tile.29
= control target key start
LH: loop header
LB: loop body
LE: loop exit
PB: predicated region body
PF: predicated region fallthrough
CT: control target
= control target key end

     0   :  { %s69_s10 = smov 112   ;;  %s70_s11 = smov 80   ;;  %vm3_vm0 = vcmask 130048   ;;  %vm9_vm1 = vcmask 1048448   ;;  %vm15_vm2 = vcmask 917248   ;;  %vm21_vm3 = vcmask 786048   ;;  %s113_s0 = inlined_call_operand.vmem [shape: f32[8,16], index: 0, kind: input, shape index: {}]   ;;  %s114_s1 = inlined_call_operand.vmem [shape: f32[1,128], index: 1, kind: output, shape index: {}]  }
   0x1   :  { %v55_v0 = vld [vmem:[%s113_s0 + $0x7] sm:$0x1]   ;;  %v57_v1 = vld [vmem:[%s113_s0 + $0x5] sm:$0x1]   ;;  %v56_v2 = vld [vmem:[%s113_s0 + $0x6] sm:$0x1]  }
   0x2   :  { %7 = vrot.lane.b32.xlu0 %v55_v0, %s69_s10  ;;  %19 = vrot.lane.b32.xlu1 %v57_v1, %s70_s11  ;;  %v58_v3 = vld [vmem:[%s113_s0 + $0x4] sm:$0x1]   ;;  %v2_v4 = vld [vmem:[%s113_s0] sm:$0x1]   ;;  %s71_s18 = smov 96   ;;  %s72_s19 = smov 64  }
   0x3   :  { %4 = vst.msk [vmem:[#allocation0] sm:$0x1] %vm3_vm0, %v2_v4   ;;  %v59_v5 = vld [vmem:[%s113_s0 + $0x3] sm:$0x1]   ;;  %v60_v6 = vld [vmem:[%s113_s0 + $0x2] sm:$0x1]  }
   0x4   :  { %s73_s24 = smov 48   ;;  %s74_s25 = smov 32   ;;  %v61_v7 = vld [vmem:[%s113_s0 + $0x1] sm:$0x1]   ;;  %vm27_vm4 = vcmask 654848   ;;  %vm33_vm5 = vcmask 523648  }
   0x5   :  { %s75_s0 = smov 16   ;;  %vm39_vm6 = vcmask 392448   ;;  %vm45_vm7 = vcmask 261248  }
   0x6   :  { %13 = vrot.lane.b32.xlu0 %v56_v2, %s71_s18  ;;  %25 = vrot.lane.b32.xlu1 %v58_v3, %s72_s19 }
   0xa   :  { %31 = vrot.lane.b32.xlu0 %v59_v5, %s73_s24  ;;  %37 = vrot.lane.b32.xlu1 %v60_v6, %s74_s25 }
   0xe   :  { %43 = vrot.lane.b32.xlu0 %v61_v7, %s75_s0 }
  0x74   :  { %v8_v8 = vpop.permute.xlu0 %7   ;;  %v20_v9 = vpop.permute.xlu1 %19  }
  0x75   :  { %10 = vst.msk [vmem:[#allocation0] sm:$0x1] %vm9_vm1, %v8_v8  }
  0x78   :  { %v14_v10 = vpop.permute.xlu0 %13   ;;  %v26_v11 = vpop.permute.xlu1 %25  }
  0x79   :  { %16 = vst.msk [vmem:[#allocation0] sm:$0x1] %vm15_vm2, %v14_v10  }
  0x7a   :  { %22 = vst.msk [vmem:[#allocation0] sm:$0x1] %vm21_vm3, %v20_v9  }
  0x7b   :  { %28 = vst.msk [vmem:[#allocation0] sm:$0x1] %vm27_vm4, %v26_v11  }
  0x7c   :  { %v32_v12 = vpop.permute.xlu0 %31   ;;  %v38_v13 = vpop.permute.xlu1 %37  }
  0x7d   :  { %34 = vst.msk [vmem:[#allocation0] sm:$0x1] %vm33_vm5, %v32_v12  }
  0x7e   :  { %40 = vst.msk [vmem:[#allocation0] sm:$0x1] %vm39_vm6, %v38_v13  }
  0x80   :  { %v44_v14 = vpop.permute.xlu0 %43  }
  0x81   :  { %46 = vst.msk [vmem:[#allocation0] sm:$0x1] %vm45_vm7, %v44_v14  }
  0x88   :  { %v51_v15 = vld [vmem:[#allocation0] sm:$0x1] }
  0x89   :  { %54 = vst [vmem:[%s114_s1] sm:$0x1] %v51_v15 }

// kernel: basic_block_forward.1
= control target key start
LH: loop header
LB: loop body
LE: loop exit
PB: predicated region body
PF: predicated region fallthrough
CT: control target
= control target key end

     0   :  { %v1269_v1 = vmov 0.0   ;;  %vm1270_vm0 = vmmov 0   ;;  %vm22_vm1 = vsmask.f32 256  ;;  %vm30_vm2 = vsmask.f32 7938  ;;  %s1581_s1 = inlined_call_operand.vmem [shape: bf16[384,128], index: 1, kind: input, shape index: {}]   ;;  %s1582_s0 = inlined_call_operand.vmem [shape: bf16[2,16,128], index: 0, kind: input, shape index: {}]   ;;  %s1583_s2 = inlined_call_operand.vmem [shape: bf16[384,128], index: 2, kind: input, shape index: {}]   ;;  %s1584_s3 = inlined_call_operand.vmem [shape: bf16[128,128], index: 3, kind: input, shape index: {}]   ;;  %s1585_s4 = inlined_call_operand.vmem [shape: f32[3,128], index: 4, kind: input, shape index: {}]   ;;  %s1586_s5 = inlined_call_operand.vmem [shape: bf16[2,8,128], index: 5, kind: output, shape index: {}]  }
   0x1   :  { %v1203_v0 = vld [vmem:[%s1581_s1 + $0x78] sm:$0xff]   ;;  %1141 = vmatprep.subr.bf16.mxu1 %v1269_v1  ;;  %1157 = vmatprep.mubr.msk.bf16.mxu1 %vm1270_vm0, %v1269_v1  ;;  %v1206_v4 = vld [vmem:[%s1581_s1 + $0x70] sm:$0xff]   ;;  %v1209_v7 = vld [vmem:[%s1581_s1 + $0x68] sm:$0xff]   ;;  %vm21_vm3 = vcmask 1040384   ;;  %vm42_vm6 = vsmask.f32 4368 }
   0x2   :  { %v1204_v2 = vld [vmem:[%s1581_s1 + $0x38] sm:$0xff]   ;;  %1070 = vmatprep.subr.bf16.mxu0 %v1203_v0  ;;  %v1207_v5 = vld [vmem:[%s1581_s1 + $0x30] sm:$0xff]   ;;  %v1210_v8 = vld [vmem:[%s1581_s1 + $0x28] sm:$0xff]   ;;  %vm84_vm8 = vcmask 1043456   ;;  %vm830_vm10 = vsmask.f32 3328 }
   0x3   :  { %v1205_v3 = vld [vmem:[%s1581_s1 + $0xb8] sm:$0xff]   ;;  %1071 = vmatpush3.bf16.msra.mxu0 %v1204_v2  ;;  %v1208_v6 = vld [vmem:[%s1581_s1 + $0xb0] sm:$0xff]   ;;  %v1211_v9 = vld [vmem:[%s1581_s1 + $0xa8] sm:$0xff]   ;;  %vm831_vm11 = vsmask.f32 7440 }
   0x4   :  { %1142 = vmatpush3.bf16.msra.mxu1 %v1205_v3  ;;  %1072 = vmatprep.subr.bf16.mxu0 %v1206_v4  ;;  %v1212_v10 = vld [vmem:[%s1581_s1 + $0x60] sm:$0xff]   ;;  %v1215_v13 = vld [vmem:[%s1581_s1 + $0x58] sm:$0xff]   ;;  %v1218_v16 = vld [vmem:[%s1581_s1 + $0x50] sm:$0xff]  }
   0x5   :  { %1143 = vmatprep.subr.bf16.mxu1 %v1269_v1  ;;  %v1213_v11 = vld [vmem:[%s1581_s1 + $0x20] sm:$0xff]   ;;  %v1216_v14 = vld [vmem:[%s1581_s1 + $0x18] sm:$0xff]   ;;  %v1219_v17 = vld [vmem:[%s1581_s1 + $0x10] sm:$0xff]  }
   0x6   :  { %v1214_v12 = vld [vmem:[%s1581_s1 + $0xa0] sm:$0xff]   ;;  %v1217_v15 = vld [vmem:[%s1581_s1 + $0x98] sm:$0xff]   ;;  %v1220_v18 = vld [vmem:[%s1581_s1 + $0x90] sm:$0xff]  }
   0x7   :  { %1073 = vmatpush3.bf16.msra.mxu0 %v1207_v5  ;;  %v1221_v19 = vld [vmem:[%s1581_s1 + $0x48] sm:$0xff]   ;;  %v1224_v22 = vld [vmem:[%s1581_s1 + $0x40] sm:$0xff]   ;;  %vm1376_vm4 = vmand %vm21_vm3, %vm22_vm1 }
   0x8   :  { %1144 = vmatpush3.bf16.msra.mxu1 %v1208_v6  ;;  %1074 = vmatprep.subr.bf16.mxu0 %v1209_v7  ;;  %v1222_v20 = vld [vmem:[%s1581_s1 + $0x8] sm:$0xff]   ;;  %v35_v25 = vld [vmem:[#allocation2 + $0x14] sm:$0x1]  ;;  %v1225_v26 = vld [vmem:[%s1581_s1] sm:$0xff]  }
   0x9   :  { %1145 = vmatprep.subr.bf16.mxu1 %v1269_v1  ;;  %v1223_v21 = vld [vmem:[%s1581_s1 + $0x88] sm:$0xff]   ;;  %vm1385_vm5 = vmand %vm21_vm3, %vm30_vm2  ;;  %v38_v28 = vld [vmem:[%s1582_s0] sm:$0xf] }
   0xa   :  { %v32_v24 = vld [vmem:[#allocation2 + $0x8] sm:$0x1]  ;;  %v39_v29 = vld [vmem:[%s1582_s0 + $0x4] sm:$0xf]  ;;  %v36_v32 = vsel %vm1385_vm5, 0, %v35_v25  ;;  %v45_v35 = vshrl.u32 %v38_v28, 16  ;;  %vm1415_vm7 = vmor %vm22_vm1, %vm42_vm6 }
   0xb   :  { %1075 = vmatpush3.bf16.msra.mxu0 %v1210_v8  ;;  %v1226_v30 = vld [vmem:[%s1581_s1 + $0x80] sm:$0xff]   ;;  %v33_v31 = vsel %vm1385_vm5, 0, %v32_v24  ;;  %v40_v33 = vld [vmem:[%s1582_s0 + $0x8] sm:$0xf]  ;;  %v41_v34 = vld [vmem:[%s1582_s0 + $0xc] sm:$0xf] }
   0xc   :  { %1146 = vmatpush3.bf16.msra.mxu1 %v1211_v9  ;;  %1076 = vmatprep.subr.bf16.mxu0 %v1212_v10  ;;  %34 = vst [vmem:[#allocation2 + $0x8] sm:$0x1] %v33_v31  ;;  %37 = vst [vmem:[#allocation2 + $0x14] sm:$0x1] %v36_v32  ;;  %v53_v36 = vshrl.u32 %v39_v29, 16  ;;  %v56_v37 = vshll.u32 %v39_v29, 16 }
   0xd   :  { %1147 = vmatprep.subr.bf16.mxu1 %v1269_v1  ;;  %v62_v38 = vshrl.u32 %v40_v33, 16  ;;  %v24_v39 = vld [vmem:[#allocation2] sm:$0x1]  ;;  %v70_v40 = vshrl.u32 %v41_v34, 16  ;;  %v73_v41 = vshll.u32 %v41_v34, 16  ;;  %v48_v44 = vshll.u32 %v38_v28, 16  ;;  %vm1426_vm9 = vmand %vm84_vm8, %vm30_vm2 }
   0xe   :  { %v25_v42 = vsel %vm1376_vm4, 0, %v24_v39  ;;  %v27_v43 = vld [vmem:[#allocation2 + $0xc] sm:$0x1]  ;;  %v47_v45 = vrot.slane %v45_v35, 7  ;;  %v55_v46 = vrot.slane %v53_v36, 7  ;;  %v65_v51 = vshll.u32 %v40_v33, 16  ;;  %vm832_vm12 = vmor %vm830_vm10, %vm831_vm11 }
   0xf   :  { %1077 = vmatpush3.bf16.msra.mxu0 %v1213_v11  ;;  %v64_v47 = vrot.slane %v62_v38, 7  ;;  %26 = vst [vmem:[#allocation2] sm:$0x1] %v25_v42  ;;  %v28_v48 = vsel %vm1376_vm4, 0, %v27_v43  ;;  %v72_v50 = vrot.slane %v70_v40, 7  ;;  %v1233_v42 = vld [vmem:[%s1583_s2 + $0x78] sm:$0xff]  }
  0x10   :  { %1148 = vmatpush3.bf16.msra.mxu1 %v1214_v12  ;;  %1078 = vmatprep.subr.bf16.mxu0 %v1215_v13  ;;  %29 = vst [vmem:[#allocation2 + $0xc] sm:$0x1] %v28_v48  ;;  %v51_v52 = vrot.slane %v47_v45, 4  ;;  %v58_v53 = vor.u32 %v56_v37, %v55_v46  ;;  %v60_v54 = vrot.slane %v55_v46, 4  ;;  %v50_v59 = vor.u32 %v48_v44, %v47_v45  ;;  %v1232_v37 = vld [vmem:[%s1583_s2 + $0xb8] sm:$0xff]   ;;  %v1235_v44 = vld [vmem:[%s1583_s2 + $0xb0] sm:$0xff]  }
  0x11   :  { %1149 = vmatprep.subr.bf16.mxu1 %v1269_v1  ;;  %v68_v55 = vrot.slane %v64_v47, 4  ;;  %v75_v56 = vor.u32 %v73_v41, %v72_v50  ;;  %v77_v57 = vrot.slane %v72_v50, 4  ;;  %v67_v63 = vor.u32 %v65_v51, %v64_v47  ;;  %v447_v38 = vld [vmem:[#allocation3] sm:$0x1]  ;;  %v453_v39 = vld [vmem:[#allocation3 + $0x4] sm:$0x1] }
  0x12   :  { %v59_v58 = vsel %vm1415_vm7, %v51_v52, %v58_v53  ;;  %v448_v40 = vsel %vm1376_vm4, 0, %v447_v38  ;;  %v454_v41 = vsel %vm1385_vm5, 0, %v453_v39  ;;  %v1234_v43 = vld [vmem:[%s1583_s2 + $0x38] sm:$0xff]   ;;  %v1236_v45 = vld [vmem:[%s1583_s2 + $0x70] sm:$0xff]   ;;  %v450_v46 = vld [vmem:[#allocation3 + $0x8] sm:$0x1] }
  0x13   :  { %1079 = vmatpush3.bf16.msra.mxu0 %v1216_v14  ;;  %v76_v60 = vsel %vm1415_vm7, %v68_v55, %v75_v56  ;;  %89 = vst [vmem:[#allocation2 + $0x4] sm:$0xf] %v59_v58  ;;  %v90_v61 = vld [vmem:[#allocation2 + $0x8] sm:$0x1]  ;;  %v97_v62 = vld [vmem:[#allocation2 + $0x14] sm:$0x1] }
  0x14   :  { %1150 = vmatpush3.bf16.msra.mxu1 %v1217_v15  ;;  %1080 = vmatprep.subr.bf16.mxu0 %v1218_v16  ;;  %v91_v2 = vsel %vm1376_vm4, %v60_v54, %v90_v61  ;;  %96 = vst [vmem:[#allocation2 + $0x10] sm:$0xf] %v76_v60  ;;  %v98_v3 = vsel %vm1376_vm4, %v77_v57, %v97_v62  ;;  %449 = vst [vmem:[#allocation3] sm:$0x1] %v448_v40  ;;  %v456_v47 = vld [vmem:[#allocation3 + $0xc] sm:$0x1] }
  0x15   :  { %1151 = vmatprep.subr.bf16.mxu1 %v1269_v1  ;;  %92 = vst [vmem:[#allocation2 + $0x8] sm:$0x1] %v91_v2  ;;  %99 = vst [vmem:[#allocation2 + $0x14] sm:$0x1] %v98_v3  ;;  %v1237_v48 = vld [vmem:[%s1583_s2 + $0x30] sm:$0xff]   ;;  %v451_v49 = vsel %vm1376_vm4, 0, %v450_v46 }
  0x16   :  { %v86_v4 = vld [vmem:[#allocation2] sm:$0xf]  ;;  %455 = vst [vmem:[#allocation3 + $0x4] sm:$0x1] %v454_v41  ;;  %v457_v50 = vsel %vm1385_vm5, 0, %v456_v47  ;;  %v1238_v51 = vld [vmem:[%s1583_s2 + $0xa8] sm:$0xff]  }
  0x17   :  { %1081 = vmatpush3.bf16.msra.mxu0 %v1219_v17  ;;  %v87_v5 = vsel %vm1426_vm9, %v50_v59, %v86_v4  ;;  %v93_v6 = vld [vmem:[#allocation2 + $0xc] sm:$0xf]  ;;  %452 = vst [vmem:[#allocation3 + $0x8] sm:$0x1] %v451_v49  ;;  %458 = vst [vmem:[#allocation3 + $0xc] sm:$0x1] %v457_v50 }
  0x18   :  { %1152 = vmatpush3.bf16.msra.mxu1 %v1220_v18  ;;  %1082 = vmatprep.subr.bf16.mxu0 %v1221_v19  ;;  %88 = vst [vmem:[#allocation2] sm:$0xf] %v87_v5  ;;  %v94_v7 = vsel %vm1426_vm9, %v67_v63, %v93_v6  ;;  %v1239_v52 = vld [vmem:[%s1583_s2 + $0x68] sm:$0xff]   ;;  %v1241_v53 = vld [vmem:[%s1583_s2 + $0xa0] sm:$0xff]   ;;  %v1244_v56 = vld [vmem:[%s1583_s2 + $0x98] sm:$0xff]  }
  0x19   :  { %1153 = vmatprep.subr.bf16.mxu1 %v1269_v1  ;;  %95 = vst [vmem:[#allocation2 + $0xc] sm:$0xf] %v94_v7  ;;  %v1240_v27 = vld [vmem:[%s1583_s2 + $0x28] sm:$0xff]   ;;  %v1242_v54 = vld [vmem:[%s1583_s2 + $0x60] sm:$0xff]   ;;  %v1245_v57 = vld [vmem:[%s1583_s2 + $0x58] sm:$0xff]  }
  0x1a   :  { %v106_v8 = vld [vmem:[#allocation2 + $0x4] sm:$0x1]  ;;  %v1246_v58 = vld [vmem:[%s1583_s2 + $0x18] sm:$0xff]   ;;  %v1247_v59 = vld [vmem:[%s1583_s2 + $0x90] sm:$0xff]  }
  0x1b   :  { %1083 = vmatpush3.bf16.msra.mxu0 %v1222_v20  ;;  %v107_v11 = vld [vmem:[#allocation2 + $0x10] sm:$0x1]  ;;  %v1243_v55 = vld [vmem:[%s1583_s2 + $0x20] sm:$0xff]   ;;  %v1250_v62 = vld [vmem:[%s1583_s2 + $0x88] sm:$0xff]  }
  0x1c   :  { %1154 = vmatpush3.bf16.msra.mxu1 %v1223_v21  ;;  %1084 = vmatprep.subr.bf16.mxu0 %v1224_v22  ;;  %v1227_v9 = vld [vmem:[#allocation2 + $0x4] sm:$0x1f]   ;;  %v1228_v10 = vld [vmem:[#allocation2 + $0x10] sm:$0x1f]  }
  0x1d   :  { %1155 = vmatprep.subr.bf16.mxu1 %v1269_v1  ;;  %v119_v12 = vshrl.u32 %v1227_v9, 16  ;;  %v121_v13 = vshll.u32 %v1227_v9, 16  ;;  %v126_v15 = vshrl.u32 %v1228_v10, 16  ;;  %v128_v16 = vshll.u32 %v1228_v10, 16  ;;  %v1248_v60 = vld [vmem:[%s1583_s2 + $0x50] sm:$0xff]   ;;  %v1251_v63 = vld [vmem:[%s1583_s2 + $0x48] sm:$0xff]  }
  0x1e   :  { %v1249_v61 = vld [vmem:[%s1583_s2 + $0x10] sm:$0xff]   ;;  %v1252_v2 = vld [vmem:[%s1583_s2 + $0x8] sm:$0xff]   ;;  %v1253_v3 = vld [vmem:[%s1583_s2 + $0x80] sm:$0xff]  }
  0x1f   :  { %1085 = vmatpush3.bf16.msra.mxu0 %v1225_v26  ;;  %v100_v14 = vld [vmem:[#allocation2] sm:$0xf]  ;;  %v123_v19 = vrot.slane %v121_v13, 1  ;;  %v130_v21 = vrot.slane %v128_v16, 1  ;;  %v496_v40 = vld [vmem:[#allocation3 + $0xc] sm:$0x1] }
  0x20   :  { %1156 = vmatpush3.bf16.msra.mxu1 %v1226_v30  ;;  %v101_v17 = vld [vmem:[#allocation2 + $0xc] sm:$0xf]  ;;  %v989_v18 = vcombine.low %v100_v14, %v106_v8  ;;  %1101 = vmatprep.subr.bf16.mxu0 %v1233_v42  ;;  %v1254_v4 = vld [vmem:[%s1583_s2 + $0x40] sm:$0xff]  }
  0x21   :  { %1161 = vmatprep.subr.bf16.mxu1 %v1269_v1  ;;  %v990_v20 = vcombine.low %v101_v17, %v107_v11  ;;  %v124_v25 = vor.u32 %v123_v19, %v119_v12  ;;  %v131_v29 = vor.u32 %v130_v21, %v126_v15  ;;  %v992_v31 = vcombine.low %v100_v14, %v101_v17  ;;  %v1257_v5 = vld [vmem:[%s1583_s2] sm:$0xff]  }
  0x22   :  { %v145_v22 = vshll.u32 %v989_v18, 16  ;;  %v143_v24 = vshrl.u32 %v989_v18, 16  ;;  %v991_v8 = vld [vmem:[%s1585_s4] ss:$0 sm:$0xff] }
  0x23   :  { %v152_v26 = vshll.u32 %v990_v20, 16  ;;  %v150_v28 = vshrl.u32 %v990_v20, 16  ;;  %v993_v33 = vcombine.low %v124_v25, %v131_v29  ;;  %v493_v39 = vld [vmem:[#allocation3 + $0x8] sm:$0xf] }
  0x24   :  { %v147_v30 = vrot.slane %v145_v22, 1 }
  0x25   :  { %v154_v32 = vrot.slane %v152_v26, 1  ;;  %395 = vmatprep.mubr.bf16.mxu0 %v993_v33 }
  0x26   :  { %v148_v34 = vor.u32 %v147_v30, %v143_v24  ;;  %396 = vmatmul.mubr.bf16.vlgmr.msra.gmra.mxu0 %v992_v31  ;;  %v487_v30 = vld [vmem:[#allocation3] sm:$0xf]  ;;  %v490_v31 = vld [vmem:[#allocation3 + $0x4] sm:$0x1] }
  0x27   :  { %v155_v35 = vor.u32 %v154_v32, %v150_v28  ;;  %1102 = vmatpush3.bf16.msra.mxu0 %v1234_v43 }
  0x28   :  { %1103 = vmatprep.subr.bf16.mxu0 %v1236_v45 }
  0x29   :  { %v994_v36 = vcombine.low %v148_v34, %v155_v35 }
  0x2b   :  { %1158 = vmatmul.mubr.bf16.vlgmr.msra.gmra.mxu1 %v994_v36  ;;  %1104 = vmatpush3.bf16.msra.mxu0 %v1237_v48 }
  0x2c   :  { %1177 = vmatprep.mubr.msk.bf16.mxu1 %vm1270_vm0, %v1269_v1  ;;  %1162 = vmatpush3.bf16.msra.mxu1 %v1232_v37 }
  0x2d   :  { %1163 = vmatprep.subr.bf16.mxu1 %v1269_v1  ;;  %1105 = vmatprep.subr.bf16.mxu0 %v1239_v52 }
  0x2f   :  { %1106 = vmatpush3.bf16.msra.mxu0 %v1240_v27 }
  0x30   :  { %1164 = vmatpush3.bf16.msra.mxu1 %v1235_v44  ;;  %1107 = vmatprep.subr.bf16.mxu0 %v1242_v54 }
  0x31   :  { %1165 = vmatprep.subr.bf16.mxu1 %v1269_v1 }
  0x33   :  { %1108 = vmatpush3.bf16.msra.mxu0 %v1243_v55 }
  0x34   :  { %1166 = vmatpush3.bf16.msra.mxu1 %v1238_v51  ;;  %1109 = vmatprep.subr.bf16.mxu0 %v1245_v57 }
  0x35   :  { %1167 = vmatprep.subr.bf16.mxu1 %v1269_v1 }
  0x37   :  { %1110 = vmatpush3.bf16.msra.mxu0 %v1246_v58 }
  0x38   :  { %1168 = vmatpush3.bf16.msra.mxu1 %v1241_v53  ;;  %1111 = vmatprep.subr.bf16.mxu0 %v1248_v60 }
  0x39   :  { %1169 = vmatprep.subr.bf16.mxu1 %v1269_v1 }
  0x3b   :  { %1112 = vmatpush3.bf16.msra.mxu0 %v1249_v61 }
  0x3c   :  { %1170 = vmatpush3.bf16.msra.mxu1 %v1244_v56  ;;  %1113 = vmatprep.subr.bf16.mxu0 %v1251_v63 }
  0x3d   :  { %1171 = vmatprep.subr.bf16.mxu1 %v1269_v1 }
  0x3f   :  { %1114 = vmatpush3.bf16.msra.mxu0 %v1252_v2  ;;  %v1261_v2 = vld [vmem:[%s1584_s3 + $0x38] sm:$0xff]  }
  0x40   :  { %1172 = vmatpush3.bf16.msra.mxu1 %v1247_v59  ;;  %1115 = vmatprep.subr.bf16.mxu0 %v1254_v4  ;;  %v1262_v4 = vld [vmem:[%s1584_s3 + $0x30] sm:$0xff]  }
  0x41   :  { %1173 = vmatprep.subr.bf16.mxu1 %v1269_v1 }
  0x43   :  { %1116 = vmatpush3.bf16.msra.mxu0 %v1257_v5  ;;  %v1263_v5 = vld [vmem:[%s1584_s3 + $0x28] sm:$0xff]  }
  0x44   :  { %1174 = vmatpush3.bf16.msra.mxu1 %v1250_v62  ;;  %1181 = vmatprep.subr.bf16.mxu0 %v1269_v1 }
  0x45   :  { %1175 = vmatprep.subr.bf16.mxu1 %v1269_v1 }
  0x48   :  { %1176 = vmatpush3.bf16.msra.mxu1 %v1253_v3 }
  0xe6   :  { %v1086_v6 = vpop.f32.mrf.mxu0 }
  0xe8   :  { %v1087_v9 = vpop.f32.mrf.mxu0 }
  0xe9   :  { %v1088_v10 = vadd.f32 %v1087_v9, %v1086_v6  ;;  %v826_v6 = vld [vmem:[#allocation2 + $0x4] sm:$0xf] }
  0xea   :  { %v1089_v12 = vpop.f32.mrf.mxu0  ;;  %v834_v9 = vshrl.u32 %v826_v6, 16 }
  0xeb   :  { %v438_v7 = vpop.f32.mrf.mxu1  ;;  %v398_v13 = vadd.f32 %v1088_v10, %v991_v8  ;;  %v837_v10 = vshll.u32 %v826_v6, 16 }
  0xec   :  { %v1090_v15 = vpop.f32.mrf.mxu0 }
  0xed   :  { %v1159_v11 = vpop.f32.mrf.mxu1  ;;  %v439_v16 = vadd.f32 %v438_v7, %v398_v13  ;;  %v1091_v17 = vadd.f32 %v1090_v15, %v1089_v12  ;;  %v828_v7 = vld [vmem:[#allocation2 + $0x10] sm:$0xf]  ;;  %v1265_v13 = vld [vmem:[%s1584_s3 + $0x18] sm:$0xff]   ;;  %v839_v15 = vrot.slane %v837_v10, 5 }
  0xee   :  { %v848_v11 = vshrl.u32 %v828_v7, 16  ;;  %v851_v12 = vshll.u32 %v828_v7, 16 }
  0xef   :  { %v441_v14 = vpop.f32.mrf.mxu1  ;;  %v445_v19 = vmax.f32 %v439_v16, 0.0  ;;  %v401_v20 = vadd.f32 %v1091_v17, %v991_v8  ;;  %v1264_v8 = vld [vmem:[%s1584_s3 + $0x20] sm:$0xff]  }
  0xf0   :  { %v850_v16 = vrot.slane %v848_v11, 4  ;;  %v853_v17 = vrot.slane %v851_v12, 5 }
  0xf1   :  { %v1160_v18 = vpop.f32.mrf.mxu1  ;;  %v1063_v21 = vpack.c.bf16 %v445_v19, %v445_v19  ;;  %v442_v22 = vadd.f32 %v441_v14, %v401_v20  ;;  %v836_v14 = vrot.slane %v834_v9, 4  ;;  %v829_v19 = vld [vmem:[#allocation2 + $0x14] sm:$0x1] }
  0xf2   :  { %v827_v18 = vld [vmem:[#allocation2 + $0x8] sm:$0x1]  ;;  %v1266_v20 = vld [vmem:[%s1584_s3 + $0x10] sm:$0xff]  }
  0xf3   :  { %v468_v24 = vshrl.u32 %v1063_v21, 16  ;;  %v446_v25 = vmax.f32 %v442_v22, 0.0  ;;  %v471_v28 = vshll.u32 %v1063_v21, 16  ;;  %v840_v21 = vor.u32 %v839_v15, %v836_v14 }
  0xf4   :  { %v843_v22 = vshll.u32 %v827_v18, 16 }
  0xf5   :  { %v470_v26 = vrot.slane %v468_v24, 7  ;;  %v1064_v29 = vpack.c.bf16 %v446_v25, %v446_v25  ;;  %v854_v24 = vor.u32 %v853_v17, %v850_v16  ;;  %v857_v25 = vshll.u32 %v829_v19, 16 }
  0xf7   :  { %v473_v32 = vor.u32 %v471_v28, %v470_v26  ;;  %v474_v33 = vrot.slane %v470_v26, 4  ;;  %v476_v34 = vshrl.u32 %v1064_v29, 16  ;;  %v479_v38 = vshll.u32 %v1064_v29, 16  ;;  %v1267_v26 = vld [vmem:[%s1584_s3 + $0x8] sm:$0xff]  }
  0xf8   :  { %v841_v28 = vrot.slane %v840_v21, 4  ;;  %v845_v29 = vrot.slane %v843_v22, 5 }
  0xf9   :  { %v488_v35 = vsel %vm1426_vm9, %v473_v32, %v487_v30  ;;  %v491_v36 = vsel %vm1376_vm4, %v474_v33, %v490_v31  ;;  %v478_v37 = vrot.slane %v476_v34, 7  ;;  %v855_v30 = vrot.slane %v854_v24, 4  ;;  %v1268_v32 = vld [vmem:[%s1584_s3] sm:$0xff]  }
  0xfa   :  { %489 = vst [vmem:[#allocation3] sm:$0xf] %v488_v35  ;;  %492 = vst [vmem:[#allocation3 + $0x4] sm:$0x1] %v491_v36  ;;  %v859_v31 = vrot.slane %v857_v25, 5  ;;  %v846_v33 = vsel %vm832_vm12, %v841_v28, %v845_v29 }
  0xfb   :  { %v481_v41 = vor.u32 %v479_v38, %v478_v37  ;;  %v482_v42 = vrot.slane %v478_v37, 4 }
  0xfc   :  { %v860_v34 = vsel %vm832_vm12, %v855_v30, %v859_v31 }
  0xfd   :  { %v494_v43 = vsel %vm1426_vm9, %v481_v41, %v493_v39  ;;  %v497_v44 = vsel %vm1376_vm4, %v482_v42, %v496_v40  ;;  %v1054_v35 = vcombine.low %v846_v33, %v860_v34 }
  0xfe   :  { %495 = vst [vmem:[#allocation3 + $0x8] sm:$0xf] %v494_v43  ;;  %498 = vst [vmem:[#allocation3 + $0xc] sm:$0x1] %v497_v44 }
 0x101   :  { %v501_v45 = vld [vmem:[#allocation3 + $0x4] sm:$0x1]  ;;  %v503_v46 = vld [vmem:[#allocation3] sm:$0xe] }
 0x102   :  { %v499_v47 = vld [vmem:[#allocation3] sm:$0xf]  ;;  %v1023_v49 = vcombine.low %v503_v46, %v501_v45 }
 0x103   :  { %v1021_v48 = vcombine.low %v499_v47, %v501_v45  ;;  %v1025_v45 = vld [vmem:[%s1585_s4 + $0x1] ss:$0 sm:$0xff] }
 0x104   :  { %v535_v55 = vrot.slane %v1023_v49, 1 }
 0x105   :  { %v518_v50 = vshll.u32 %v1021_v48, 16  ;;  %v502_v51 = vld [vmem:[#allocation3 + $0xc] sm:$0x1]  ;;  %v504_v52 = vld [vmem:[#allocation3 + $0x8] sm:$0xe]  ;;  %v516_v23 = vshrl.u32 %v1021_v48, 16 }
 0x106   :  { %v500_v27 = vld [vmem:[#allocation3 + $0x8] sm:$0xf]  ;;  %v1024_v53 = vcombine.low %v504_v52, %v502_v51 }
 0x107   :  { %v1022_v54 = vcombine.low %v500_v27, %v502_v51  ;;  %v520_v0 = vrot.slane %v518_v50, 1  ;;  %v1026_v3 = vcombine.low %v499_v47, %v500_v27 }
 0x108   :  { %v536_v56 = vrot.slane %v1024_v53, 1 }
 0x109   :  { %v525_v57 = vshll.u32 %v1022_v54, 16  ;;  %v523_v59 = vshrl.u32 %v1022_v54, 16  ;;  %v521_v61 = vor.u32 %v520_v0, %v516_v23 }
 0x10a   :  { %v1028_v58 = vcombine.low %v535_v55, %v536_v56 }
 0x10b   :  { %v527_v60 = vrot.slane %v525_v57, 1 }
 0x10c   :  { %1178 = vmatmul.mubr.bf16.vlgmr.msra.gmra.mxu1 %v1028_v58 }
 0x10d   :  { %v528_v62 = vor.u32 %v527_v60, %v523_v59 }
 0x10f   :  { %v1027_v63 = vcombine.low %v521_v61, %v528_v62 }
 0x111   :  { %776 = vmatprep.mubr.bf16.mxu0 %v1027_v63 }
 0x112   :  { %777 = vmatmul.mubr.bf16.vlgmr.msra.gmra.mxu0 %v1026_v3 }
 0x113   :  { %1182 = vmatpush3.bf16.msra.mxu0 %v1261_v2  ;;  %1197 = vmatprep.mubr.msk.bf16.mxu0 %vm1270_vm0, %v1269_v1 }
 0x114   :  { %1183 = vmatprep.subr.bf16.mxu0 %v1269_v1 }
 0x117   :  { %1184 = vmatpush3.bf16.msra.mxu0 %v1262_v4 }
 0x118   :  { %1185 = vmatprep.subr.bf16.mxu0 %v1269_v1 }
 0x11b   :  { %1186 = vmatpush3.bf16.msra.mxu0 %v1263_v5 }
 0x11c   :  { %1187 = vmatprep.subr.bf16.mxu0 %v1269_v1 }
 0x11f   :  { %1188 = vmatpush3.bf16.msra.mxu0 %v1264_v8 }
 0x120   :  { %1189 = vmatprep.subr.bf16.mxu0 %v1269_v1 }
 0x123   :  { %1190 = vmatpush3.bf16.msra.mxu0 %v1265_v13 }
 0x124   :  { %1191 = vmatprep.subr.bf16.mxu0 %v1269_v1 }
 0x127   :  { %1192 = vmatpush3.bf16.msra.mxu0 %v1266_v20 }
 0x128   :  { %1193 = vmatprep.subr.bf16.mxu0 %v1269_v1 }
 0x12b   :  { %1194 = vmatpush3.bf16.msra.mxu0 %v1267_v26 }
 0x12c   :  { %1195 = vmatprep.subr.bf16.mxu0 %v1269_v1  ;;  %v1053_v1 = vld [vmem:[%s1585_s4 + $0x2] ss:$0 sm:$0xff] }
 0x12f   :  { %1196 = vmatpush3.bf16.msra.mxu0 %v1268_v32 }
 0x132   :  { %1198 = vmatmul.mubr.bf16.vlgmr.msra.gmra.mxu0 %v1054_v35 }
 0x1cc   :  { %v819_v36 = vpop.f32.mrf.mxu1 }
 0x1ce   :  { %v1179_v37 = vpop.f32.mrf.mxu1 }
 0x1d0   :  { %v822_v38 = vpop.f32.mrf.mxu1 }
 0x1d2   :  { %v1180_v39 = vpop.f32.mrf.mxu1  ;;  %v1117_v40 = vpop.f32.mrf.mxu0 }
 0x1d4   :  { %v1118_v41 = vpop.f32.mrf.mxu0 }
 0x1d5   :  { %v1119_v44 = vadd.f32 %v1118_v41, %v1117_v40 }
 0x1d6   :  { %v1120_v42 = vpop.f32.mrf.mxu0 }
 0x1d7   :  { %v779_v47 = vadd.f32 %v1119_v44, %v1025_v45 }
 0x1d8   :  { %v1121_v43 = vpop.f32.mrf.mxu0 }
 0x1d9   :  { %v1122_v46 = vadd.f32 %v1121_v43, %v1120_v42  ;;  %v820_v52 = vadd.f32 %v819_v36, %v779_v47 }
 0x1db   :  { %v782_v49 = vadd.f32 %v1122_v46, %v1025_v45 }
 0x1dd   :  { %v823_v54 = vadd.f32 %v822_v38, %v782_v49 }
 0x1f2   :  { %v968_v48 = vpop.f32.mrf.mxu0 }
 0x1f3   :  { %v969_v50 = vadd.f32 %v1053_v1, %v968_v48 }
 0x1f4   :  { %v1199_v51 = vpop.f32.mrf.mxu0 }
 0x1f5   :  { %v975_v53 = vadd.f32 %v969_v50, %v820_v52 }
 0x1f6   :  { %v971_v27 = vpop.f32.mrf.mxu0 }
 0x1f7   :  { %v972_v55 = vadd.f32 %v1053_v1, %v971_v27  ;;  %v977_v57 = vmax.f32 %v975_v53, 0.0 }
 0x1f8   :  { %v1200_v56 = vpop.f32.mrf.mxu0 }
 0x1f9   :  { %v976_v0 = vadd.f32 %v972_v55, %v823_v54 }
 0x1fb   :  { %v978_v58 = vmax.f32 %v976_v0, 0.0 }
 0x1fd   :  { %v1068_v23 = vpack.c.bf16 %v978_v58, %v977_v57 }
 0x1ff   :  { %1069 = vst [vmem:[%s1586_s5] sm:$0xff] %v1068_v23  }

</bundles_post_ra>
